<compile_context>
chip_gen: v5e
topology: v5e:2x2
jax: 0.10.0
libtpu: 0.0.40
codegen_flags: <defaults>
</compile_context>

<pallas_src>
import functools

import jax
import jax.numpy as jnp
from jax.experimental import pallas as pl
from jax.experimental.pallas import tpu as pltpu

_LANES = 128
_FUSED_BYTES_BUDGET = 4 * 1024 * 1024   # fused whole-array path if total <= 4 MiB
_TILE_BYTES = 4 * 1024 * 1024           # per-buffer tile budget on the tiled path

_SLOPE_A = (1.0 / 8.0 + 1.0 / 3.0) / 2.0   # nn.RReLU() defaults -> 11/48
_SLOPE_B = (0.1 + 0.42) / 2.0              # nn.RReLU(0.1, 0.42) -> 0.26


def _round_up(n, m):
    return ((n + m - 1) // m) * m


def _as_lane_view(t):
    """Free (metadata-only) 2D view; lane-dense (N, 128) when possible."""
    size = int(t.size)
    if size % _LANES == 0 and size > 0:
        return t.reshape(size // _LANES, _LANES)
    if t.ndim >= 2:
        return t.reshape(-1, t.shape[-1])
    return t.reshape(1, size)


def _rrelu_body(x_ref, o_ref, slope):
    # t = v*2 - 1 ; eval-mode RReLU with deterministic slope.
    t = x_ref[...] * 2.0 - 1.0
    o_ref[...] = t * jnp.where(t >= 0, 1.0, slope)


def _fused_kernel(*refs, slopes):
    n = len(slopes)
    in_refs, out_refs = refs[:n], refs[n:]
    for x_ref, o_ref, slope in zip(in_refs, out_refs, slopes):
        _rrelu_body(x_ref, o_ref, slope)


def _fused_call(views, slopes):
    """Single pallas_call; each tensor is a whole-array VMEM block."""
    in_specs = [pl.BlockSpec(v.shape, lambda i: (0, 0)) for v in views]
    out_specs = [pl.BlockSpec(v.shape, lambda i: (0, 0)) for v in views]
    out_shape = [jax.ShapeDtypeStruct(v.shape, v.dtype) for v in views]
    return pl.pallas_call(
        functools.partial(_fused_kernel, slopes=tuple(slopes)),
        out_shape=out_shape,
        grid=(1,),
        in_specs=in_specs,
        out_specs=out_specs,
        compiler_params=pltpu.CompilerParams(
            dimension_semantics=("arbitrary",),
        ),
    )(*views)


def _tiled_kernel(x_ref, o_ref, *, slope):
    _rrelu_body(x_ref, o_ref, slope)


def _tiled_call(v, slope):
    """Row-tiled per-tensor path for large inputs (not hit at test sizes)."""
    rows, cols = v.shape
    itemsize = v.dtype.itemsize
    rows_by_bytes = max(8, (_TILE_BYTES // max(cols * itemsize, 1)) // 8 * 8)
    half_rows = max(8, _round_up(pl.cdiv(rows, 2), 8))  # >=2 blocks: v7x megacore
    tile_rows = max(8, min(rows_by_bytes, half_rows))
    if tile_rows >= rows:
        tile_rows = rows  # single full-extent block is always layout-legal
    grid = (pl.cdiv(rows, tile_rows),)
    return pl.pallas_call(
        functools.partial(_tiled_kernel, slope=slope),
        out_shape=jax.ShapeDtypeStruct(v.shape, v.dtype),
        grid=grid,
        in_specs=[pl.BlockSpec((tile_rows, cols), lambda i: (i, 0))],
        out_specs=pl.BlockSpec((tile_rows, cols), lambda i: (i, 0)),
        compiler_params=pltpu.CompilerParams(
            dimension_semantics=("parallel",),
            vmem_limit_bytes=32 * 1024 * 1024,  # headroom over v5e's 16 MiB default
        ),
    )(v)


def model_forward(x, y, z, w):
    """Fused forward of the RReLU test Model: returns (x', y', z', w')."""
    tensors = (x, y, z, w)
    slopes = (_SLOPE_A, _SLOPE_A, _SLOPE_B, _SLOPE_B)

    views = [_as_lane_view(t) for t in tensors]
    total_bytes = sum(int(v.size) * v.dtype.itemsize for v in views)

    if total_bytes <= _FUSED_BYTES_BUDGET:
        outs = _fused_call(views, slopes)           # one dispatched op
    else:
        outs = [_tiled_call(v, s) for v, s in zip(views, slopes)]

    return tuple(o.reshape(t.shape) for o, t in zip(outs, tensors))


def _reference(x, y, z, w):
    def ref_one(v, lo, hi):
        t = v * 2.0 - 1.0
        slope = (lo + hi) / 2.0
        return jnp.where(t >= 0, t, t * slope)

    return (
        ref_one(x, 1.0 / 8.0, 1.0 / 3.0),
        ref_one(y, 1.0 / 8.0, 1.0 / 3.0),
        ref_one(z, 0.1, 0.42),
        ref_one(w, 0.1, 0.42),
    )


if __name__ == "__main__":
    key = jax.random.PRNGKey(0)
    k0, k1, k2, k3 = jax.random.split(key, 4)

    # small ascending-rank shapes mirroring the original test inputs
    x = jax.random.uniform(k0, (2, 12), dtype=jnp.float32)
    y = jax.random.uniform(k1, (2, 12, 64), dtype=jnp.float32)
    z = jax.random.uniform(k2, (2, 3, 24, 64), dtype=jnp.float32)
    w = jax.random.uniform(k3, (2, 3, 4, 16, 64), dtype=jnp.float32)

    outs = jax.block_until_ready(model_forward(x, y, z, w))

    refs = _reference(x, y, z, w)
    for o, r in zip(outs, refs):
        assert o.shape == r.shape and o.dtype == r.dtype
        assert jnp.max(jnp.abs(o - r)) < 1e-6

    print("KERNEL_OK")
</pallas_src>

<mosaic_0001>
module attributes {stable_mosaic.version = 11 : i64} {
  func.func @_fused_kernel(%arg0: i32, %arg1: memref<2x12xf32, #tpu.memory_space<vmem>>, %arg2: memref<12x128xf32, #tpu.memory_space<vmem>>, %arg3: memref<72x128xf32, #tpu.memory_space<vmem>>, %arg4: memref<192x128xf32, #tpu.memory_space<vmem>>, %arg5: memref<2x12xf32, #tpu.memory_space<vmem>>, %arg6: memref<12x128xf32, #tpu.memory_space<vmem>>, %arg7: memref<72x128xf32, #tpu.memory_space<vmem>>, %arg8: memref<192x128xf32, #tpu.memory_space<vmem>>) attributes {dimension_semantics = [#tpu.dimension_semantics<arbitrary>], iteration_bounds = array<i64: 1>, scalar_prefetch = 0 : i64, scratch_operands = 0 : i64, tpu.core_type = #tpu.core_type<tc>, window_params = [{pipeline_mode = #tpu.pipeline_mode<synchronous>, transform_indices = @transform_0, window_bounds = array<i64: 2, 12>}, {pipeline_mode = #tpu.pipeline_mode<synchronous>, transform_indices = @transform_1, window_bounds = array<i64: 12, 128>}, {pipeline_mode = #tpu.pipeline_mode<synchronous>, transform_indices = @transform_2, window_bounds = array<i64: 72, 128>}, {pipeline_mode = #tpu.pipeline_mode<synchronous>, transform_indices = @transform_3, window_bounds = array<i64: 192, 128>}, {pipeline_mode = #tpu.pipeline_mode<synchronous>, transform_indices = @transform_4, window_bounds = array<i64: 2, 12>}, {pipeline_mode = #tpu.pipeline_mode<synchronous>, transform_indices = @transform_5, window_bounds = array<i64: 12, 128>}, {pipeline_mode = #tpu.pipeline_mode<synchronous>, transform_indices = @transform_6, window_bounds = array<i64: 72, 128>}, {pipeline_mode = #tpu.pipeline_mode<synchronous>, transform_indices = @transform_7, window_bounds = array<i64: 192, 128>}]} {
    %c0 = arith.constant 0 : index
    %c0_0 = arith.constant 0 : index
    %0 = vector.load %arg1[%c0, %c0_0] : memref<2x12xf32, #tpu.memory_space<vmem>>, vector<2x12xf32>
    %cst = arith.constant 2.000000e+00 : f32
    %1 = vector.broadcast %cst : f32 to vector<2x12xf32>
    %2 = arith.mulf %0, %1 : vector<2x12xf32>
    %cst_1 = arith.constant 1.000000e+00 : f32
    %3 = vector.broadcast %cst_1 : f32 to vector<2x12xf32>
    %4 = arith.subf %2, %3 : vector<2x12xf32>
    %cst_2 = arith.constant 0.000000e+00 : f32
    %5 = vector.broadcast %cst_2 : f32 to vector<2x12xf32>
    %6 = arith.cmpf oge, %4, %5 : vector<2x12xf32>
    %cst_3 = arith.constant 1.000000e+00 : f32
    %cst_4 = arith.constant 0.229166672 : f32
    %7 = vector.broadcast %cst_3 : f32 to vector<2x12xf32>
    %8 = vector.broadcast %cst_4 : f32 to vector<2x12xf32>
    %9 = arith.select %6, %7, %8 : vector<2x12xi1>, vector<2x12xf32>
    %10 = arith.mulf %4, %9 : vector<2x12xf32>
    %c0_5 = arith.constant 0 : index
    %c0_6 = arith.constant 0 : index
    %11 = vector.load %arg5[%c0_5, %c0_6] : memref<2x12xf32, #tpu.memory_space<vmem>>, vector<2x12xf32>
    tpu.vector_store %arg5[%c0_5, %c0_6], %10 {strides = array<i32>} : memref<2x12xf32, #tpu.memory_space<vmem>>, vector<2x12xf32>,
    %c0_7 = arith.constant 0 : index
    %c0_8 = arith.constant 0 : index
    %12 = vector.load %arg2[%c0_7, %c0_8] : memref<12x128xf32, #tpu.memory_space<vmem>>, vector<12x128xf32>
    %cst_9 = arith.constant 2.000000e+00 : f32
    %13 = vector.broadcast %cst_9 : f32 to vector<12x128xf32>
    %14 = arith.mulf %12, %13 : vector<12x128xf32>
    %cst_10 = arith.constant 1.000000e+00 : f32
    %15 = vector.broadcast %cst_10 : f32 to vector<12x128xf32>
    %16 = arith.subf %14, %15 : vector<12x128xf32>
    %cst_11 = arith.constant 0.000000e+00 : f32
    %17 = vector.broadcast %cst_11 : f32 to vector<12x128xf32>
    %18 = arith.cmpf oge, %16, %17 : vector<12x128xf32>
    %cst_12 = arith.constant 1.000000e+00 : f32
    %cst_13 = arith.constant 0.229166672 : f32
    %19 = vector.broadcast %cst_12 : f32 to vector<12x128xf32>
    %20 = vector.broadcast %cst_13 : f32 to vector<12x128xf32>
    %21 = arith.select %18, %19, %20 : vector<12x128xi1>, vector<12x128xf32>
    %22 = arith.mulf %16, %21 : vector<12x128xf32>
    %c0_14 = arith.constant 0 : index
    %c0_15 = arith.constant 0 : index
    %23 = vector.load %arg6[%c0_14, %c0_15] : memref<12x128xf32, #tpu.memory_space<vmem>>, vector<12x128xf32>
    tpu.vector_store %arg6[%c0_14, %c0_15], %22 {strides = array<i32>} : memref<12x128xf32, #tpu.memory_space<vmem>>, vector<12x128xf32>,
    %c0_16 = arith.constant 0 : index
    %c0_17 = arith.constant 0 : index
    %24 = vector.load %arg3[%c0_16, %c0_17] : memref<72x128xf32, #tpu.memory_space<vmem>>, vector<72x128xf32>
    %cst_18 = arith.constant 2.000000e+00 : f32
    %25 = vector.broadcast %cst_18 : f32 to vector<72x128xf32>
    %26 = arith.mulf %24, %25 : vector<72x128xf32>
    %cst_19 = arith.constant 1.000000e+00 : f32
    %27 = vector.broadcast %cst_19 : f32 to vector<72x128xf32>
    %28 = arith.subf %26, %27 : vector<72x128xf32>
    %cst_20 = arith.constant 0.000000e+00 : f32
    %29 = vector.broadcast %cst_20 : f32 to vector<72x128xf32>
    %30 = arith.cmpf oge, %28, %29 : vector<72x128xf32>
    %cst_21 = arith.constant 1.000000e+00 : f32
    %cst_22 = arith.constant 2.600000e-01 : f32
    %31 = vector.broadcast %cst_21 : f32 to vector<72x128xf32>
    %32 = vector.broadcast %cst_22 : f32 to vector<72x128xf32>
    %33 = arith.select %30, %31, %32 : vector<72x128xi1>, vector<72x128xf32>
    %34 = arith.mulf %28, %33 : vector<72x128xf32>
    %c0_23 = arith.constant 0 : index
    %c0_24 = arith.constant 0 : index
    %35 = vector.load %arg7[%c0_23, %c0_24] : memref<72x128xf32, #tpu.memory_space<vmem>>, vector<72x128xf32>
    tpu.vector_store %arg7[%c0_23, %c0_24], %34 {strides = array<i32>} : memref<72x128xf32, #tpu.memory_space<vmem>>, vector<72x128xf32>,
    %c0_25 = arith.constant 0 : index
    %c0_26 = arith.constant 0 : index
    %36 = vector.load %arg4[%c0_25, %c0_26] : memref<192x128xf32, #tpu.memory_space<vmem>>, vector<192x128xf32>
    %cst_27 = arith.constant 2.000000e+00 : f32
    %37 = vector.broadcast %cst_27 : f32 to vector<192x128xf32>
    %38 = arith.mulf %36, %37 : vector<192x128xf32>
    %cst_28 = arith.constant 1.000000e+00 : f32
    %39 = vector.broadcast %cst_28 : f32 to vector<192x128xf32>
    %40 = arith.subf %38, %39 : vector<192x128xf32>
    %cst_29 = arith.constant 0.000000e+00 : f32
    %41 = vector.broadcast %cst_29 : f32 to vector<192x128xf32>
    %42 = arith.cmpf oge, %40, %41 : vector<192x128xf32>
    %cst_30 = arith.constant 1.000000e+00 : f32
    %cst_31 = arith.constant 2.600000e-01 : f32
    %43 = vector.broadcast %cst_30 : f32 to vector<192x128xf32>
    %44 = vector.broadcast %cst_31 : f32 to vector<192x128xf32>
    %45 = arith.select %42, %43, %44 : vector<192x128xi1>, vector<192x128xf32>
    %46 = arith.mulf %40, %45 : vector<192x128xf32>
    %c0_32 = arith.constant 0 : index
    %c0_33 = arith.constant 0 : index
    %47 = vector.load %arg8[%c0_32, %c0_33] : memref<192x128xf32, #tpu.memory_space<vmem>>, vector<192x128xf32>
    tpu.vector_store %arg8[%c0_32, %c0_33], %46 {strides = array<i32>} : memref<192x128xf32, #tpu.memory_space<vmem>>, vector<192x128xf32>,
    return
  }
  func.func @transform_0(%arg0: i32) -> (i32, i32) {
    %c0_i32 = arith.constant 0 : i32
    %c0_i32_0 = arith.constant 0 : i32
    %c0_i32_1 = arith.constant 0 : i32
    return %c0_i32, %c0_i32_0 : i32, i32
  }
  func.func @transform_1(%arg0: i32) -> (i32, i32) {
    %c0_i32 = arith.constant 0 : i32
    %c0_i32_0 = arith.constant 0 : i32
    %c0_i32_1 = arith.constant 0 : i32
    return %c0_i32, %c0_i32_0 : i32, i32
  }
  func.func @transform_2(%arg0: i32) -> (i32, i32) {
    %c0_i32 = arith.constant 0 : i32
    %c0_i32_0 = arith.constant 0 : i32
    %c0_i32_1 = arith.constant 0 : i32
    return %c0_i32, %c0_i32_0 : i32, i32
  }
  func.func @transform_3(%arg0: i32) -> (i32, i32) {
    %c0_i32 = arith.constant 0 : i32
    %c0_i32_0 = arith.constant 0 : i32
    %c0_i32_1 = arith.constant 0 : i32
    return %c0_i32, %c0_i32_0 : i32, i32
  }
  func.func @transform_4(%arg0: i32) -> (i32, i32) {
    %c0_i32 = arith.constant 0 : i32
    %c0_i32_0 = arith.constant 0 : i32
    %c0_i32_1 = arith.constant 0 : i32
    return %c0_i32, %c0_i32_0 : i32, i32
  }
  func.func @transform_5(%arg0: i32) -> (i32, i32) {
    %c0_i32 = arith.constant 0 : i32
    %c0_i32_0 = arith.constant 0 : i32
    %c0_i32_1 = arith.constant 0 : i32
    return %c0_i32, %c0_i32_0 : i32, i32
  }
  func.func @transform_6(%arg0: i32) -> (i32, i32) {
    %c0_i32 = arith.constant 0 : i32
    %c0_i32_0 = arith.constant 0 : i32
    %c0_i32_1 = arith.constant 0 : i32
    return %c0_i32, %c0_i32_0 : i32, i32
  }
  func.func @transform_7(%arg0: i32) -> (i32, i32) {
    %c0_i32 = arith.constant 0 : i32
    %c0_i32_0 = arith.constant 0 : i32
    %c0_i32_1 = arith.constant 0 : i32
    return %c0_i32, %c0_i32_0 : i32, i32
  }
}

</mosaic_0001>

<bundles_post_ra>
// kernel: tpu_custom_call.1
= control target key start
LH: loop header
LB: loop body
LE: loop exit
PB: predicated region body
PF: predicated region fallthrough
CT: control target
= control target key end

     0   :  { %13 = vsyncpa [#allocation3], 0  ;;  %s813_s0 = inlined_call_operand.hbm [shape: f32[2,12], index: 0, kind: input, shape index: {}]   ;;  %s814_s1 = inlined_call_operand.hbm [shape: f32[12,128], index: 1, kind: input, shape index: {}]   ;;  %s815_s2 = inlined_call_operand.hbm [shape: f32[72,128], index: 2, kind: input, shape index: {}]   ;;  %s816_s3 = inlined_call_operand.hbm [shape: f32[192,128], index: 3, kind: input, shape index: {}]   ;;  %s817_s4 = inlined_call_operand.hbm [shape: f32[2,12], index: 4, kind: output, shape index: {0}]   ;;  %s818_s5 = inlined_call_operand.hbm [shape: f32[12,128], index: 5, kind: output, shape index: {1}]   ;;  %s819_s6 = inlined_call_operand.hbm [shape: f32[72,128], index: 6, kind: output, shape index: {2}]   ;;  %s820_s7 = inlined_call_operand.hbm [shape: f32[192,128], index: 7, kind: output, shape index: {3}]  }
   0x1   :  { %14 = vsyncpa [#allocation6], 0 }
   0x2   :  { %15 = vsyncpa [#allocation9], 0 }
   0x3   :  { %16 = vsyncpa [#allocation4], 0 }
   0x4   :  { %17 = vsyncpa [#allocation12], 0  ;;  %s34_s26 = sshll.u32 %s814_s1, 4  ;;  %s35_s26 = int_to_ptr.hbm [resolvable:$true] %s34_s26 }
   0x5   :  { %18 = vsyncpa [#allocation15], 0  ;;  %s662_s27 = smov [#allocation5]   ;;  %s24_s8 = sshll.u32 %s813_s0, 4  ;;  %s25_s8 = int_to_ptr.hbm [resolvable:$true] %s24_s8 }
   0x6   :  { %s36_s28 = sshll.u32 %s662_s27, 4  ;;  %s663_s9 = smov 128   ;;  %s37_s28 = int_to_ptr.vmem [resolvable:$true] %s36_s28 }
   0x7   :  { %s664_s10 = smov 8   ;;  %s665_s11 = smov [#allocation2]  }
   0x8   :  { %42 = dma.hbm_to_vmem [thread:$0]  %s35_s26, 256, %s37_s28, [#allocation6], %s663_s9, %s663_s9, %s664_s10  }
   0x9   :  { %s26_s12 = sshll.u32 %s665_s11, 4  ;;  %s47_s14 = sshll.u32 %s815_s2, 4  ;;  %s27_s12 = int_to_ptr.vmem [resolvable:$true] %s26_s12  ;;  %s48_s14 = int_to_ptr.hbm [resolvable:$true] %s47_s14 }
   0xa   :  { %29 = dma.hbm_to_vmem [thread:$0]  %s25_s8, 32, %s27_s12, [#allocation3]  }
   0xb   :  { %s60_s0 = sshll.u32 %s816_s3, 4  ;;  %s666_s17 = smov [#allocation7]   ;;  %s61_s0 = int_to_ptr.hbm [resolvable:$true] %s60_s0 }
   0xc   :  { %s49_s18 = sshll.u32 %s666_s17, 4  ;;  %s667_s19 = smov [#allocation8]   ;;  %s50_s18 = int_to_ptr.vmem [resolvable:$true] %s49_s18 }
   0xd   :  { %55 = dma.hbm_to_vmem [thread:$0]  %s48_s14, 1152, %s50_s18, [#allocation6], %s663_s9, %s663_s9, %s664_s10  }
   0xe   :  { %s62_s20 = sshll.u32 %s667_s19, 4  ;;  %s63_s20 = int_to_ptr.vmem [resolvable:$true] %s62_s20 }
   0xf   :  { %68 = dma.hbm_to_vmem [thread:$0]  %s61_s0, 3072, %s63_s20, [#allocation9], %s663_s9, %s663_s9, %s664_s10  }
  0x10   :  { %650 = dma.done.wait [#allocation3], 32  }
  0x11   :  { %651 = vsyncadd [#allocation3], 4294967264 }
  0x12   :  { %652 = dma.done.wait [#allocation6], 1408  }
  0x13   :  { %653 = vsyncadd [#allocation6], 4294965888 }
  0x14   :  { %654 = dma.done.wait [#allocation9], 3072  }
  0x15   :  { %655 = vsyncadd [#allocation9], 4294964224  ;;  %v93_v0 = vld [vmem:[#allocation5] sm:$0xff]  ;;  %v94_v1 = vld [vmem:[#allocation5 + $0x8] sm:$0xf]  ;;  %vm91_vm0 = vcmask 91136  }
  0x16   :  { %v85_v2 = vld [vmem:[#allocation2] sm:$0x3]  ;;  %v95_v3 = vmul.f32 2.0, %v93_v0  ;;  %v96_v4 = vmul.f32 2.0, %v94_v1  ;;  %v107_v6 = vld [vmem:[#allocation7] sm:$0xff]  ;;  %v109_v8 = vld [vmem:[#allocation7 + $0x10] sm:$0xff] }
  0x17   :  { %v86_v5 = vmul.f32 2.0, %v85_v2  ;;  %v108_v7 = vld [vmem:[#allocation7 + $0x8] sm:$0xff]  ;;  %v116_v9 = vmul.f32 2.0, %v107_v6  ;;  %v118_v11 = vmul.f32 2.0, %v109_v8  ;;  %v110_v12 = vld [vmem:[#allocation7 + $0x18] sm:$0xff]  ;;  %v111_v13 = vld [vmem:[#allocation7 + $0x20] sm:$0xff] }
  0x18   :  { %v117_v10 = vmul.f32 2.0, %v108_v7  ;;  %v411_v14 = vadd.f32 -1.0, %v95_v3  ;;  %v412_v15 = vadd.f32 -1.0, %v96_v4  ;;  %v119_v17 = vmul.f32 2.0, %v110_v12  ;;  %v112_v32 = vld [vmem:[#allocation7 + $0x28] sm:$0xff]  ;;  %v113_v33 = vld [vmem:[#allocation7 + $0x30] sm:$0xff] }
  0x19   :  { %v410_v16 = vadd.f32 -1.0, %v86_v5  ;;  %v413_v18 = vadd.f32 -1.0, %v116_v9  ;;  %v415_v20 = vadd.f32 -1.0, %v118_v11  ;;  %v120_v21 = vmul.f32 2.0, %v111_v13  ;;  %s670_s2 = smov [#allocation11]   ;;  %s355_s23 = sshll.u32 %s818_s5, 4  ;;  %s356_s23 = int_to_ptr.hbm [resolvable:$true] %s355_s23 }
  0x1a   :  { %v414_v19 = vadd.f32 -1.0, %v117_v10  ;;  %vm99_vm1 = vcmp.ge.f32.partialorder %v411_v14, 0.0  ;;  %vm100_vm2 = vcmp.ge.f32.partialorder %v412_v15, 0.0  ;;  %v416_v22 = vadd.f32 -1.0, %v119_v17  ;;  %s736_s3 = sshll.u32 %s670_s2, 4  ;;  %v114_v35 = vld [vmem:[#allocation7 + $0x38] sm:$0xff]  ;;  %s354_s3 = int_to_ptr.vmem [resolvable:$true] %s736_s3 }
  0x1b   :  { %vm88_vm3 = vcmp.ge.f32.partialorder %v410_v16, 0.0  ;;  %v668_v23 = vmov 0.22916667   ;;  %vm134_vm4 = vcmp.ge.f32.partialorder %v413_v18, 0.0  ;;  %v669_v30 = vmov 0.26  }
  0x1c   :  { %v101_v24 = vsel %vm99_vm1, 1.0, %v668_v23  ;;  %v102_v25 = vsel %vm100_vm2, 1.0, %v668_v23  ;;  %v89_v26 = vsel %vm88_vm3, 1.0, %v668_v23  ;;  %v143_v31 = vsel %vm134_vm4, 1.0, %v669_v30  ;;  %v115_v36 = vld [vmem:[#allocation7 + $0x40] sm:$0xff]  ;;  %v170_v37 = vld [vmem:[#allocation8] sm:$0xff] }
  0x1d   :  { %v103_v27 = vmul.f32 %v411_v14, %v101_v24  ;;  %v104_v28 = vmul.f32 %v412_v15, %v102_v25  ;;  %v90_v29 = vmul.f32 %v410_v16, %v89_v26  ;;  %v152_v34 = vmul.f32 %v413_v18, %v143_v31  ;;  %v171_v42 = vld [vmem:[#allocation8 + $0x8] sm:$0xff]  ;;  %v172_v47 = vld [vmem:[#allocation8 + $0x10] sm:$0xff]  ;;  %s345_s26 = sshll.u32 %s817_s4, 4  ;;  %s671_s27 = smov [#allocation10]   ;;  %v173_v63 = vld [vmem:[#allocation8 + $0x18] sm:$0xff]  ;;  %s346_s26 = int_to_ptr.hbm [resolvable:$true] %s345_s26 }
  0x1e   :  { %vm135_vm5 = vcmp.ge.f32.partialorder %v414_v19, 0.0  ;;  %vm136_vm6 = vcmp.ge.f32.partialorder %v415_v20, 0.0  ;;  %vm137_vm7 = vcmp.ge.f32.partialorder %v416_v22, 0.0  ;;  %v417_v41 = vadd.f32 -1.0, %v120_v21  ;;  %s750_s28 = sshll.u32 %s671_s27, 4  ;;  %s672_s29 = smov [#allocation13]   ;;  %s344_s28 = int_to_ptr.vmem [resolvable:$true] %s750_s28 }
  0x1f   :  { %105 = vst [vmem:[#allocation11] sm:$0xff] %v103_v27  ;;  %v144_v38 = vsel %vm135_vm5, 1.0, %v669_v30  ;;  %v145_v39 = vsel %vm136_vm6, 1.0, %v669_v30  ;;  %v146_v40 = vsel %vm137_vm7, 1.0, %v669_v30  ;;  %v121_v46 = vmul.f32 2.0, %v112_v32  ;;  %s752_s30 = sshll.u32 %s672_s29, 4  ;;  %s367_s30 = int_to_ptr.vmem [resolvable:$true] %s752_s30 }
  0x20   :  { %106 = vst [vmem:[#allocation11 + $0x8] sm:$0xf] %v104_v28  ;;  %v153_v43 = vmul.f32 %v414_v19, %v144_v38  ;;  %v154_v44 = vmul.f32 %v415_v20, %v145_v39  ;;  %v155_v45 = vmul.f32 %v416_v22, %v146_v40  ;;  %vm138_vm8 = vcmp.ge.f32.partialorder %v417_v41, 0.0  ;;  %s368_s1 = sshll.u32 %s819_s6, 4  ;;  %v174_v4 = vld [vmem:[#allocation8 + $0x20] sm:$0xff]  ;;  %v175_v5 = vld [vmem:[#allocation8 + $0x28] sm:$0xff]  ;;  %s369_s1 = int_to_ptr.hbm [resolvable:$true] %s368_s1 }
  0x21   :  { %92 = vst.msk [vmem:[#allocation10] sm:$0x3] %vm91_vm0, %v90_v29  ;;  %v122_v48 = vmul.f32 2.0, %v113_v33  ;;  %v123_v49 = vmul.f32 2.0, %v114_v35  ;;  %v124_v50 = vmul.f32 2.0, %v115_v36  ;;  %v147_v51 = vsel %vm138_vm8, 1.0, %v669_v30 }
  0x22   :  { %161 = vst [vmem:[#allocation13] sm:$0xff] %v152_v34  ;;  %v418_v52 = vadd.f32 -1.0, %v121_v46  ;;  %v194_v53 = vmul.f32 2.0, %v170_v37  ;;  %v195_v54 = vmul.f32 2.0, %v171_v42  ;;  %v156_v55 = vmul.f32 %v417_v41, %v147_v51  ;;  %v176_v9 = vld [vmem:[#allocation8 + $0x30] sm:$0xff]  ;;  %v177_v10 = vld [vmem:[#allocation8 + $0x38] sm:$0xff] }
  0x23   :  { %162 = vst [vmem:[#allocation13 + $0x8] sm:$0xff] %v153_v43  ;;  %v419_v56 = vadd.f32 -1.0, %v122_v48  ;;  %v420_v57 = vadd.f32 -1.0, %v123_v49  ;;  %v421_v58 = vadd.f32 -1.0, %v124_v50  ;;  %v196_v61 = vmul.f32 2.0, %v172_v47  ;;  %v178_v14 = vld [vmem:[#allocation8 + $0x40] sm:$0xff] }
  0x24   :  { %163 = vst [vmem:[#allocation13 + $0x10] sm:$0xff] %v154_v44  ;;  %vm139_vm9 = vcmp.ge.f32.partialorder %v418_v52, 0.0  ;;  %v422_v59 = vadd.f32 -1.0, %v194_v53  ;;  %v423_v60 = vadd.f32 -1.0, %v195_v54  ;;  %361 = dma.vmem_to_hbm [thread:$0]  %s354_s3, 256, %s356_s23, [#allocation12], %s663_s9, %s663_s9, %s664_s10  }
  0x25   :  { %164 = vst [vmem:[#allocation13 + $0x18] sm:$0xff] %v155_v45  ;;  %v148_v62 = vsel %vm139_vm9, 1.0, %v669_v30  ;;  %vm140_vm10 = vcmp.ge.f32.partialorder %v419_v56, 0.0  ;;  %vm141_vm11 = vcmp.ge.f32.partialorder %v420_v57, 0.0  ;;  %vm142_vm12 = vcmp.ge.f32.partialorder %v421_v58, 0.0  ;;  %v179_v26 = vld [vmem:[#allocation8 + $0x48] sm:$0xff] }
  0x26   :  { %165 = vst [vmem:[#allocation13 + $0x20] sm:$0xff] %v156_v55  ;;  %v157_v0 = vmul.f32 %v418_v52, %v148_v62  ;;  %v149_v1 = vsel %vm140_vm10, 1.0, %v669_v30  ;;  %v150_v2 = vsel %vm141_vm11, 1.0, %v669_v30  ;;  %v151_v3 = vsel %vm142_vm12, 1.0, %v669_v30  ;;  %348 = dma.vmem_to_hbm [thread:$0]  %s344_s28, 32, %s346_s26, [#allocation4]  }
  0x27   :  { %v158_v6 = vmul.f32 %v419_v56, %v149_v1  ;;  %v159_v7 = vmul.f32 %v420_v57, %v150_v2  ;;  %v160_v8 = vmul.f32 %v421_v58, %v151_v3  ;;  %vm242_vm13 = vcmp.ge.f32.partialorder %v422_v59, 0.0  ;;  %v180_v33 = vld [vmem:[#allocation8 + $0x50] sm:$0xff]  ;;  %v181_v37 = vld [vmem:[#allocation8 + $0x58] sm:$0xff]  ;;  %v182_v38 = vld [vmem:[#allocation8 + $0x60] sm:$0xff]  ;;  %s673_s6 = smov [#allocation14]   ;;  %s381_s18 = sshll.u32 %s820_s7, 4  ;;  %s382_s18 = int_to_ptr.hbm [resolvable:$true] %s381_s18 }
  0x28   :  { %166 = vst [vmem:[#allocation13 + $0x28] sm:$0xff] %v157_v0  ;;  %v266_v11 = vsel %vm242_vm13, 1.0, %v669_v30  ;;  %vm243_vm14 = vcmp.ge.f32.partialorder %v423_v60, 0.0  ;;  %v424_v12 = vadd.f32 -1.0, %v196_v61  ;;  %v197_v13 = vmul.f32 2.0, %v173_v63  ;;  %v183_v42 = vld [vmem:[#allocation8 + $0x68] sm:$0xff] }
  0x29   :  { %167 = vst [vmem:[#allocation13 + $0x30] sm:$0xff] %v158_v6  ;;  %v290_v15 = vmul.f32 %v422_v59, %v266_v11  ;;  %v267_v16 = vsel %vm243_vm14, 1.0, %v669_v30  ;;  %v198_v17 = vmul.f32 2.0, %v174_v4  ;;  %v199_v18 = vmul.f32 2.0, %v175_v5  ;;  %v184_v43 = vld [vmem:[#allocation8 + $0x70] sm:$0xff]  ;;  %v185_v63 = vld [vmem:[#allocation8 + $0x78] sm:$0xff] }
  0x2a   :  { %168 = vst [vmem:[#allocation13 + $0x38] sm:$0xff] %v159_v7  ;;  %v291_v19 = vmul.f32 %v423_v60, %v267_v16  ;;  %vm244_vm15 = vcmp.ge.f32.partialorder %v424_v12, 0.0  ;;  %v425_v20 = vadd.f32 -1.0, %v197_v13  ;;  %v200_v21 = vmul.f32 2.0, %v176_v9  ;;  %v186_v0 = vld [vmem:[#allocation8 + $0x80] sm:$0xff]  ;;  %v187_v5 = vld [vmem:[#allocation8 + $0x88] sm:$0xff] }
  0x2b   :  { %169 = vst [vmem:[#allocation13 + $0x40] sm:$0xff] %v160_v8  ;;  %v268_v22 = vsel %vm244_vm15, 1.0, %v669_v30  ;;  %v426_v23 = vadd.f32 -1.0, %v198_v17  ;;  %v427_v24 = vadd.f32 -1.0, %v199_v18  ;;  %v201_v25 = vmul.f32 2.0, %v177_v10  ;;  %v188_v6 = vld [vmem:[#allocation8 + $0x90] sm:$0xff] }
  0x2c   :  { %314 = vst [vmem:[#allocation14] sm:$0xff] %v290_v15  ;;  %v292_v27 = vmul.f32 %v424_v12, %v268_v22  ;;  %vm245_vm0 = vcmp.ge.f32.partialorder %v425_v20, 0.0  ;;  %v428_v28 = vadd.f32 -1.0, %v200_v21  ;;  %v202_v29 = vmul.f32 2.0, %v178_v14  ;;  %374 = dma.vmem_to_hbm [thread:$0]  %s367_s30, 1152, %s369_s1, [#allocation12], %s663_s9, %s663_s9, %s664_s10  }
  0x2d   :  { %315 = vst [vmem:[#allocation14 + $0x8] sm:$0xff] %v291_v19  ;;  %v269_v31 = vsel %vm245_vm0, 1.0, %v669_v30  ;;  %vm246_vm1 = vcmp.ge.f32.partialorder %v426_v23, 0.0  ;;  %vm247_vm2 = vcmp.ge.f32.partialorder %v427_v24, 0.0  ;;  %v429_v32 = vadd.f32 -1.0, %v201_v25  ;;  %v189_v10 = vld [vmem:[#allocation8 + $0x98] sm:$0xff] }
  0x2e   :  { %316 = vst [vmem:[#allocation14 + $0x10] sm:$0xff] %v292_v27  ;;  %v293_v34 = vmul.f32 %v425_v20, %v269_v31  ;;  %v270_v35 = vsel %vm246_vm1, 1.0, %v669_v30  ;;  %v271_v36 = vsel %vm247_vm2, 1.0, %v669_v30  ;;  %vm248_vm3 = vcmp.ge.f32.partialorder %v428_v28, 0.0  ;;  %v190_v11 = vld [vmem:[#allocation8 + $0xa0] sm:$0xff]  ;;  %v191_v15 = vld [vmem:[#allocation8 + $0xa8] sm:$0xff] }
  0x2f   :  { %v294_v39 = vmul.f32 %v426_v23, %v270_v35  ;;  %v295_v40 = vmul.f32 %v427_v24, %v271_v36  ;;  %v272_v41 = vsel %vm248_vm3, 1.0, %v669_v30  ;;  %vm249_vm4 = vcmp.ge.f32.partialorder %v429_v32, 0.0  ;;  %v192_v20 = vld [vmem:[#allocation8 + $0xb0] sm:$0xff]  ;;  %s379_s16 = sshll.u32 %s673_s6, 4  ;;  %s380_s16 = int_to_ptr.vmem [resolvable:$true] %s379_s16 }
  0x30   :  { %317 = vst [vmem:[#allocation14 + $0x18] sm:$0xff] %v293_v34  ;;  %v296_v44 = vmul.f32 %v428_v28, %v272_v41  ;;  %v273_v45 = vsel %vm249_vm4, 1.0, %v669_v30  ;;  %v430_v46 = vadd.f32 -1.0, %v202_v29  ;;  %v203_v47 = vmul.f32 2.0, %v179_v26  ;;  %v193_v34 = vld [vmem:[#allocation8 + $0xb8] sm:$0xff] }
  0x31   :  { %318 = vst [vmem:[#allocation14 + $0x20] sm:$0xff] %v294_v39  ;;  %v297_v48 = vmul.f32 %v429_v32, %v273_v45  ;;  %v204_v49 = vmul.f32 2.0, %v180_v33  ;;  %v205_v50 = vmul.f32 2.0, %v181_v37  ;;  %v206_v51 = vmul.f32 2.0, %v182_v38 }
  0x32   :  { %319 = vst [vmem:[#allocation14 + $0x28] sm:$0xff] %v295_v40  ;;  %vm250_vm5 = vcmp.ge.f32.partialorder %v430_v46, 0.0  ;;  %v431_v52 = vadd.f32 -1.0, %v203_v47  ;;  %v207_v53 = vmul.f32 2.0, %v183_v42  ;;  %v208_v54 = vmul.f32 2.0, %v184_v43 }
  0x33   :  { %320 = vst [vmem:[#allocation14 + $0x30] sm:$0xff] %v296_v44  ;;  %v274_v55 = vsel %vm250_vm5, 1.0, %v669_v30  ;;  %v432_v56 = vadd.f32 -1.0, %v204_v49  ;;  %v433_v57 = vadd.f32 -1.0, %v205_v50  ;;  %v434_v58 = vadd.f32 -1.0, %v206_v51 }
  0x34   :  { %321 = vst [vmem:[#allocation14 + $0x38] sm:$0xff] %v297_v48  ;;  %v298_v59 = vmul.f32 %v430_v46, %v274_v55  ;;  %vm251_vm6 = vcmp.ge.f32.partialorder %v431_v52, 0.0  ;;  %v435_v60 = vadd.f32 -1.0, %v207_v53  ;;  %v436_v61 = vadd.f32 -1.0, %v208_v54 }
  0x35   :  { %v275_v62 = vsel %vm251_vm6, 1.0, %v669_v30  ;;  %vm252_vm7 = vcmp.ge.f32.partialorder %v432_v56, 0.0  ;;  %vm253_vm8 = vcmp.ge.f32.partialorder %v433_v57, 0.0  ;;  %vm254_vm9 = vcmp.ge.f32.partialorder %v434_v58, 0.0 }
  0x36   :  { %322 = vst [vmem:[#allocation14 + $0x40] sm:$0xff] %v298_v59  ;;  %v299_v1 = vmul.f32 %v431_v52, %v275_v62  ;;  %v276_v2 = vsel %vm252_vm7, 1.0, %v669_v30  ;;  %v277_v3 = vsel %vm253_vm8, 1.0, %v669_v30  ;;  %v278_v4 = vsel %vm254_vm9, 1.0, %v669_v30 }
  0x37   :  { %v300_v7 = vmul.f32 %v432_v56, %v276_v2  ;;  %v301_v8 = vmul.f32 %v433_v57, %v277_v3  ;;  %v302_v9 = vmul.f32 %v434_v58, %v278_v4  ;;  %vm255_vm10 = vcmp.ge.f32.partialorder %v435_v60, 0.0 }
  0x38   :  { %323 = vst [vmem:[#allocation14 + $0x48] sm:$0xff] %v299_v1  ;;  %v279_v12 = vsel %vm255_vm10, 1.0, %v669_v30  ;;  %vm256_vm11 = vcmp.ge.f32.partialorder %v436_v61, 0.0  ;;  %v209_v13 = vmul.f32 2.0, %v185_v63  ;;  %v210_v14 = vmul.f32 2.0, %v186_v0 }
  0x39   :  { %324 = vst [vmem:[#allocation14 + $0x50] sm:$0xff] %v300_v7  ;;  %v303_v16 = vmul.f32 %v435_v60, %v279_v12  ;;  %v280_v17 = vsel %vm256_vm11, 1.0, %v669_v30  ;;  %v211_v18 = vmul.f32 2.0, %v187_v5  ;;  %v212_v19 = vmul.f32 2.0, %v188_v6 }
  0x3a   :  { %325 = vst [vmem:[#allocation14 + $0x58] sm:$0xff] %v301_v8  ;;  %v304_v21 = vmul.f32 %v436_v61, %v280_v17  ;;  %v437_v22 = vadd.f32 -1.0, %v209_v13  ;;  %v438_v23 = vadd.f32 -1.0, %v210_v14  ;;  %v213_v24 = vmul.f32 2.0, %v189_v10 }
  0x3b   :  { %326 = vst [vmem:[#allocation14 + $0x60] sm:$0xff] %v302_v9  ;;  %v439_v25 = vadd.f32 -1.0, %v211_v18  ;;  %v440_v26 = vadd.f32 -1.0, %v212_v19  ;;  %v214_v27 = vmul.f32 2.0, %v190_v11  ;;  %v215_v28 = vmul.f32 2.0, %v191_v15 }
  0x3c   :  { %327 = vst [vmem:[#allocation14 + $0x68] sm:$0xff] %v303_v16  ;;  %vm257_vm12 = vcmp.ge.f32.partialorder %v437_v22, 0.0  ;;  %vm258_vm13 = vcmp.ge.f32.partialorder %v438_v23, 0.0  ;;  %v441_v29 = vadd.f32 -1.0, %v213_v24  ;;  %v216_v31 = vmul.f32 2.0, %v192_v20 }
  0x3d   :  { %328 = vst [vmem:[#allocation14 + $0x70] sm:$0xff] %v304_v21  ;;  %v281_v32 = vsel %vm257_vm12, 1.0, %v669_v30  ;;  %v282_v33 = vsel %vm258_vm13, 1.0, %v669_v30  ;;  %vm259_vm14 = vcmp.ge.f32.partialorder %v439_v25, 0.0  ;;  %vm260_vm15 = vcmp.ge.f32.partialorder %v440_v26, 0.0 }
  0x3e   :  { %v305_v35 = vmul.f32 %v437_v22, %v281_v32  ;;  %v306_v36 = vmul.f32 %v438_v23, %v282_v33  ;;  %v283_v37 = vsel %vm259_vm14, 1.0, %v669_v30  ;;  %v284_v38 = vsel %vm260_vm15, 1.0, %v669_v30 }
  0x3f   :  { %v307_v39 = vmul.f32 %v439_v25, %v283_v37  ;;  %v308_v40 = vmul.f32 %v440_v26, %v284_v38  ;;  %vm261_vm0 = vcmp.ge.f32.partialorder %v441_v29, 0.0  ;;  %v442_v41 = vadd.f32 -1.0, %v214_v27 }
  0x40   :  { %329 = vst [vmem:[#allocation14 + $0x78] sm:$0xff] %v305_v35  ;;  %v285_v42 = vsel %vm261_vm0, 1.0, %v669_v30  ;;  %v443_v43 = vadd.f32 -1.0, %v215_v28  ;;  %v444_v44 = vadd.f32 -1.0, %v216_v31  ;;  %v217_v45 = vmul.f32 2.0, %v193_v34 }
  0x41   :  { %330 = vst [vmem:[#allocation14 + $0x80] sm:$0xff] %v306_v36  ;;  %v309_v46 = vmul.f32 %v441_v29, %v285_v42  ;;  %vm262_vm1 = vcmp.ge.f32.partialorder %v442_v41, 0.0 }
  0x42   :  { %331 = vst [vmem:[#allocation14 + $0x88] sm:$0xff] %v307_v39  ;;  %v286_v47 = vsel %vm262_vm1, 1.0, %v669_v30  ;;  %vm263_vm2 = vcmp.ge.f32.partialorder %v443_v43, 0.0  ;;  %vm264_vm3 = vcmp.ge.f32.partialorder %v444_v44, 0.0  ;;  %v445_v48 = vadd.f32 -1.0, %v217_v45 }
  0x43   :  { %332 = vst [vmem:[#allocation14 + $0x90] sm:$0xff] %v308_v40  ;;  %v310_v49 = vmul.f32 %v442_v41, %v286_v47  ;;  %v287_v50 = vsel %vm263_vm2, 1.0, %v669_v30  ;;  %v288_v51 = vsel %vm264_vm3, 1.0, %v669_v30 }
  0x44   :  { %333 = vst [vmem:[#allocation14 + $0x98] sm:$0xff] %v309_v46  ;;  %v311_v52 = vmul.f32 %v443_v43, %v287_v50  ;;  %v312_v53 = vmul.f32 %v444_v44, %v288_v51  ;;  %vm265_vm4 = vcmp.ge.f32.partialorder %v445_v48, 0.0 }
  0x45   :  { %334 = vst [vmem:[#allocation14 + $0xa0] sm:$0xff] %v310_v49  ;;  %v289_v54 = vsel %vm265_vm4, 1.0, %v669_v30 }
  0x46   :  { %335 = vst [vmem:[#allocation14 + $0xa8] sm:$0xff] %v311_v52  ;;  %v313_v55 = vmul.f32 %v445_v48, %v289_v54 }
  0x47   :  { %336 = vst [vmem:[#allocation14 + $0xb0] sm:$0xff] %v312_v53 }
  0x48   :  { %337 = vst [vmem:[#allocation14 + $0xb8] sm:$0xff] %v313_v55 }
  0x49   :  { %387 = dma.vmem_to_hbm [thread:$0]  %s380_s16, 3072, %s382_s18, [#allocation15], %s663_s9, %s663_s9, %s664_s10  }
  0x4a   :  { %656 = dma.done.wait [#allocation4], 32  }
  0x4b   :  { %657 = vsyncadd [#allocation4], 4294967264 }
  0x4c   :  { %658 = dma.done.wait [#allocation12], 1408  }
  0x4d   :  { %659 = vsyncadd [#allocation12], 4294965888 }
  0x4e   :  { %660 = dma.done.wait [#allocation15], 3072  }
  0x4f   :  { %661 = vsyncadd [#allocation15], 4294964224 }
  0x50   :  { %404 = vsyncpa [#allocation3], 1 }
  0x51   :  { %405 = vsyncpa [#allocation6], 1 }
  0x52   :  { %406 = vsyncpa [#allocation9], 1 }
  0x53   :  { %407 = vsyncpa [#allocation4], 1 }
  0x54   :  { %408 = vsyncpa [#allocation12], 1 }
  0x55   :  { %409 = vsyncpa [#allocation15], 1 }

</bundles_post_ra>
